<compile_context>
chip_gen: v7x
topology: tpu7x:2x2x1
jax: 0.10.0
libtpu: 0.0.40
codegen_flags: <defaults>
</compile_context>

<pallas_src>
import functools

import jax
import jax.numpy as jnp
from jax.experimental import pallas as pl
from jax.experimental.pallas import tpu as pltpu

LANES = 128        # lane (minor) dimension of the slab
TILE_M_MAX = 4096  # max rows per block: 4096*128*4B = 2 MiB per f32 input block
NCORES = 2         # leading "parallel" grid axis (uses both TCs on v7x)
VMEM_LIMIT = 32 * 1024 * 1024  # comfortable headroom for 2x2x2 MiB + output


def _round_up(n, m):
    return ((n + m - 1) // m) * m


def _focal_kernel(x_ref, t_ref, o_ref, *, gamma, valid_rows, tile_m, bpc):
    c = pl.program_id(0)   # core index (parallel axis)
    i = pl.program_id(1)   # row-block index within this core (arbitrary axis)

    @pl.when(i == 0)
    def _():
        o_ref[...] = jnp.zeros_like(o_ref)

    x = x_ref[...].astype(jnp.float32)
    t = t_ref[...].astype(jnp.float32)

    # Stable BCE-with-logits:
    #   input - input*target + max(-input,0) + log(exp(-max)+exp(-input-max))
    # == x - x*t + max(-x, 0) + log1p(exp(-|x|))   (one exp instead of two)
    loss = x - x * t + jnp.maximum(-x, 0.0) + jnp.log1p(jnp.exp(-jnp.abs(x)))

    # invprobs = logsigmoid(-x * (2t - 1)), stable general form (soft-label safe)
    z = -x * (t * 2.0 - 1.0)
    invprobs = jnp.minimum(z, 0.0) - jnp.log1p(jnp.exp(-jnp.abs(z)))
    loss = jnp.exp(invprobs * gamma) * loss

    gb = c * bpc + i            # global (unclamped) row-block index
    row0 = gb * tile_m          # first global row covered by this block
    needs_mask = row0 + tile_m > valid_rows  # only edge / out-of-range blocks

    @pl.when(jnp.logical_not(needs_mask))
    def _():
        # Fold (tile_m, LANES) -> (8, LANES) with pure VPU (vreg-wise) adds.
        o_ref[...] += jnp.sum(loss.reshape(tile_m // 8, 8, LANES), axis=0)

    @pl.when(needs_mask)
    def _():
        rows = jax.lax.broadcasted_iota(jnp.int32, loss.shape, 0) + row0
        lm = jnp.where(rows < valid_rows, loss, 0.0)
        o_ref[...] += jnp.sum(lm.reshape(tile_m // 8, 8, LANES), axis=0)


def _focal_elementwise(x, t, gamma):
    x = x.astype(jnp.float32)
    t = t.astype(jnp.float32)
    loss = x - x * t + jnp.maximum(-x, 0.0) + jnp.log1p(jnp.exp(-jnp.abs(x)))
    z = -x * (t * 2.0 - 1.0)
    invprobs = jnp.minimum(z, 0.0) - jnp.log1p(jnp.exp(-jnp.abs(z)))
    return jnp.exp(invprobs * gamma) * loss


def focal_loss(inputs, targets, gamma):
    if inputs.shape != targets.shape:
        raise ValueError(
            "Target size ({}) must be the same as input size ({})".format(
                targets.shape, inputs.shape
            )
        )
    total = int(inputs.size)
    gamma = float(gamma)

    x = jnp.ravel(inputs)
    t = jnp.ravel(targets)

    rows = total // LANES          # full lane-rows handled by the kernel
    tail = total - rows * LANES    # leftover (< 128) elements, jnp epilogue

    loss_sum = jnp.zeros((), jnp.float32)

    if rows > 0:
        xb = (x if tail == 0 else x[: rows * LANES]).reshape(rows, LANES)
        tb = (t if tail == 0 else t[: rows * LANES]).reshape(rows, LANES)

        tile_m = min(TILE_M_MAX, _round_up(rows, 8))
        nblocks = pl.cdiv(rows, tile_m)
        bpc = pl.cdiv(nblocks, NCORES)   # row-blocks per core

        kernel = functools.partial(
            _focal_kernel, gamma=gamma, valid_rows=rows, tile_m=tile_m, bpc=bpc
        )

        # Clamp the block index so out-of-range (c, i) pairs re-read a valid
        # block; their contribution is fully masked out in-kernel.
        def in_map(c, i):
            return (jnp.minimum(c * bpc + i, nblocks - 1), 0)

        partials = pl.pallas_call(
            kernel,
            out_shape=jax.ShapeDtypeStruct((NCORES * 8, LANES), jnp.float32),
            grid_spec=pltpu.PrefetchScalarGridSpec(
                num_scalar_prefetch=0,
                grid=(NCORES, bpc),
                in_specs=[
                    pl.BlockSpec((tile_m, LANES), in_map),
                    pl.BlockSpec((tile_m, LANES), in_map),
                ],
                out_specs=pl.BlockSpec((8, LANES), lambda c, i: (c, 0)),
            ),
            compiler_params=pltpu.CompilerParams(
                dimension_semantics=("parallel", "arbitrary"),
                vmem_limit_bytes=VMEM_LIMIT,
            ),
        )(xb, tb)
        loss_sum = loss_sum + jnp.sum(partials)

    if tail > 0:
        loss_sum = loss_sum + jnp.sum(
            _focal_elementwise(x[rows * LANES :], t[rows * LANES :], gamma)
        )

    return loss_sum / jnp.float32(total)


def focal_loss_ref(inputs, targets, gamma):
    # Literal translation of the PyTorch module.
    x = inputs.astype(jnp.float32)
    t = targets.astype(jnp.float32)
    max_val = jnp.maximum(-x, 0.0)
    loss = x - x * t + max_val + jnp.log(jnp.exp(-max_val) + jnp.exp(-x - max_val))
    invprobs = jax.nn.log_sigmoid(-x * (t * 2.0 - 1.0))
    loss = jnp.exp(invprobs * gamma) * loss
    return jnp.mean(loss)


if __name__ == "__main__":
    key = jax.random.PRNGKey(0)
    k1, k2 = jax.random.split(key)

    # NCHW logits and {0,1} targets, same shape (as required by the module).
    B, C, H, W = 2, 4, 16, 16
    gamma = 2.0
    logits = jax.random.normal(k1, (B, C, H, W), dtype=jnp.float32)
    targets = (jax.random.uniform(k2, (B, C, H, W)) > 0.5).astype(jnp.float32)

    out = focal_loss(logits, targets, gamma)
    out = jax.block_until_ready(out)

    ref = focal_loss_ref(logits, targets, gamma)
    assert jnp.allclose(out, ref, rtol=1e-5, atol=1e-6), (out, ref)

    print("KERNEL_OK")
</pallas_src>

<mosaic_0001>
module attributes {stable_mosaic.version = 11 : i64} {
  func.func @_focal_kernel(%arg0: i32, %arg1: i32, %arg2: memref<16x128xf32, #tpu.memory_space<vmem>>, %arg3: memref<16x128xf32, #tpu.memory_space<vmem>>, %arg4: memref<8x128xf32, #tpu.memory_space<vmem>>) attributes {dimension_semantics = [#tpu.dimension_semantics<parallel>, #tpu.dimension_semantics<arbitrary>], iteration_bounds = array<i64: 2, 1>, scalar_prefetch = 0 : i64, scratch_operands = 0 : i64, tpu.core_type = #tpu.core_type<tc>, window_params = [{transform_indices = @transform_0, window_bounds = array<i64: 16, 128>}, {transform_indices = @transform_1, window_bounds = array<i64: 16, 128>}, {transform_indices = @transform_2, window_bounds = array<i64: 8, 128>}]} {
    %c0_i32 = arith.constant 0 : i32
    %0 = arith.cmpi eq, %arg1, %c0_i32 : i32
    %1 = arith.extui %0 : i1 to i32
    %c0_i32_0 = arith.constant 0 : i32
    %2 = arith.cmpi ne, %1, %c0_i32_0 : i32
    scf.if %2 {
      %cst_16 = arith.constant 0.000000e+00 : f32
      %47 = vector.broadcast %cst_16 : f32 to vector<8x128xf32>
      %c0_17 = arith.constant 0 : index
      %c0_18 = arith.constant 0 : index
      %48 = vector.load %arg4[%c0_17, %c0_18] : memref<8x128xf32, #tpu.memory_space<vmem>>, vector<8x128xf32>
      tpu.vector_store %arg4[%c0_17, %c0_18], %47 {strides = array<i32>} : memref<8x128xf32, #tpu.memory_space<vmem>>, vector<8x128xf32>,
    } else {
    }
    %c0 = arith.constant 0 : index
    %c0_1 = arith.constant 0 : index
    %3 = vector.load %arg2[%c0, %c0_1] : memref<16x128xf32, #tpu.memory_space<vmem>>, vector<16x128xf32>
    %c0_2 = arith.constant 0 : index
    %c0_3 = arith.constant 0 : index
    %4 = vector.load %arg3[%c0_2, %c0_3] : memref<16x128xf32, #tpu.memory_space<vmem>>, vector<16x128xf32>
    %5 = arith.mulf %3, %4 : vector<16x128xf32>
    %6 = arith.subf %3, %5 : vector<16x128xf32>
    %cst = arith.constant 0.000000e+00 : f32
    %7 = vector.broadcast %cst : f32 to vector<16x128xf32>
    %8 = arith.subf %7, %3 : vector<16x128xf32>
    %cst_4 = arith.constant 0.000000e+00 : f32
    %9 = vector.broadcast %cst_4 : f32 to vector<16x128xf32>
    %10 = arith.maximumf %8, %9 : vector<16x128xf32>
    %11 = arith.addf %6, %10 : vector<16x128xf32>
    %12 = math.absf %3 : vector<16x128xf32>
    %cst_5 = arith.constant 0.000000e+00 : f32
    %13 = vector.broadcast %cst_5 : f32 to vector<16x128xf32>
    %14 = arith.subf %13, %12 : vector<16x128xf32>
    %15 = math.exp %14 : vector<16x128xf32>
    %16 = math.log1p %15 : vector<16x128xf32>
    %17 = arith.addf %11, %16 : vector<16x128xf32>
    %cst_6 = arith.constant 0.000000e+00 : f32
    %18 = vector.broadcast %cst_6 : f32 to vector<16x128xf32>
    %19 = arith.subf %18, %3 : vector<16x128xf32>
    %cst_7 = arith.constant 2.000000e+00 : f32
    %20 = vector.broadcast %cst_7 : f32 to vector<16x128xf32>
    %21 = arith.mulf %4, %20 : vector<16x128xf32>
    %cst_8 = arith.constant 1.000000e+00 : f32
    %22 = vector.broadcast %cst_8 : f32 to vector<16x128xf32>
    %23 = arith.subf %21, %22 : vector<16x128xf32>
    %24 = arith.mulf %19, %23 : vector<16x128xf32>
    %cst_9 = arith.constant 0.000000e+00 : f32
    %25 = vector.broadcast %cst_9 : f32 to vector<16x128xf32>
    %26 = arith.minimumf %24, %25 : vector<16x128xf32>
    %27 = math.absf %24 : vector<16x128xf32>
    %cst_10 = arith.constant 0.000000e+00 : f32
    %28 = vector.broadcast %cst_10 : f32 to vector<16x128xf32>
    %29 = arith.subf %28, %27 : vector<16x128xf32>
    %30 = math.exp %29 : vector<16x128xf32>
    %31 = math.log1p %30 : vector<16x128xf32>
    %32 = arith.subf %26, %31 : vector<16x128xf32>
    %cst_11 = arith.constant 2.000000e+00 : f32
    %33 = vector.broadcast %cst_11 : f32 to vector<16x128xf32>
    %34 = arith.mulf %32, %33 : vector<16x128xf32>
    %35 = math.exp %34 : vector<16x128xf32>
    %36 = arith.mulf %35, %17 : vector<16x128xf32>
    %c1_i32 = arith.constant 1 : i32
    %37 = arith.muli %arg0, %c1_i32 : i32
    %38 = arith.addi %37, %arg1 : i32
    %c16_i32 = arith.constant 16 : i32
    %39 = arith.muli %38, %c16_i32 : i32
    %c16_i32_12 = arith.constant 16 : i32
    %40 = arith.addi %39, %c16_i32_12 : i32
    %c16_i32_13 = arith.constant 16 : i32
    %41 = arith.cmpi sgt, %40, %c16_i32_13 : i32
    %true = arith.constant true
    %42 = arith.xori %41, %true : i1
    %43 = arith.extui %42 : i1 to i32
    %c0_i32_14 = arith.constant 0 : i32
    %44 = arith.cmpi ne, %43, %c0_i32_14 : i32
    scf.if %44 {
      %c0_16 = arith.constant 0 : index
      %c0_17 = arith.constant 0 : index
      %47 = vector.load %arg4[%c0_16, %c0_17] : memref<8x128xf32, #tpu.memory_space<vmem>>, vector<8x128xf32>
      %48 = vector.shape_cast %36 : vector<16x128xf32> to vector<2x8x128xf32>
      %cst_18 = arith.constant dense<0.000000e+00> : vector<8x128xf32>
      %49 = vector.multi_reduction <add>, %48, %cst_18 [0] : vector<2x8x128xf32> to vector<8x128xf32>
      %50 = arith.addf %47, %49 : vector<8x128xf32>
      %c0_19 = arith.constant 0 : index
      %c0_20 = arith.constant 0 : index
      %51 = vector.load %arg4[%c0_19, %c0_20] : memref<8x128xf32, #tpu.memory_space<vmem>>, vector<8x128xf32>
      tpu.vector_store %arg4[%c0_19, %c0_20], %50 {strides = array<i32>} : memref<8x128xf32, #tpu.memory_space<vmem>>, vector<8x128xf32>,
    } else {
    }
    %45 = arith.extui %41 : i1 to i32
    %c0_i32_15 = arith.constant 0 : i32
    %46 = arith.cmpi ne, %45, %c0_i32_15 : i32
    scf.if %46 {
      %47 = tpu.iota {dimensions = array<i32: 0>} : vector<16x128xi32>
      %48 = vector.broadcast %39 : i32 to vector<16x128xi32>
      %49 = arith.addi %47, %48 : vector<16x128xi32>
      %c16_i32_16 = arith.constant 16 : i32
      %50 = vector.broadcast %c16_i32_16 : i32 to vector<16x128xi32>
      %51 = arith.cmpi slt, %49, %50 : vector<16x128xi32>
      %cst_17 = arith.constant 0.000000e+00 : f32
      %52 = vector.broadcast %cst_17 : f32 to vector<16x128xf32>
      %53 = arith.select %51, %36, %52 : vector<16x128xi1>, vector<16x128xf32>
      %c0_18 = arith.constant 0 : index
      %c0_19 = arith.constant 0 : index
      %54 = vector.load %arg4[%c0_18, %c0_19] : memref<8x128xf32, #tpu.memory_space<vmem>>, vector<8x128xf32>
      %55 = vector.shape_cast %53 : vector<16x128xf32> to vector<2x8x128xf32>
      %cst_20 = arith.constant dense<0.000000e+00> : vector<8x128xf32>
      %56 = vector.multi_reduction <add>, %55, %cst_20 [0] : vector<2x8x128xf32> to vector<8x128xf32>
      %57 = arith.addf %54, %56 : vector<8x128xf32>
      %c0_21 = arith.constant 0 : index
      %c0_22 = arith.constant 0 : index
      %58 = vector.load %arg4[%c0_21, %c0_22] : memref<8x128xf32, #tpu.memory_space<vmem>>, vector<8x128xf32>
      tpu.vector_store %arg4[%c0_21, %c0_22], %57 {strides = array<i32>} : memref<8x128xf32, #tpu.memory_space<vmem>>, vector<8x128xf32>,
    } else {
    }
    return
  }
  func.func @transform_0(%arg0: i32, %arg1: i32) -> (i32, i32) {
    %c1_i32 = arith.constant 1 : i32
    %0 = arith.muli %arg0, %c1_i32 : i32
    %1 = arith.addi %0, %arg1 : i32
    %c0_i32 = arith.constant 0 : i32
    %2 = arith.minsi %1, %c0_i32 : i32
    %c0_i32_0 = arith.constant 0 : i32
    %c0_i32_1 = arith.constant 0 : i32
    return %2, %c0_i32_0 : i32, i32
  }
  func.func @transform_1(%arg0: i32, %arg1: i32) -> (i32, i32) {
    %c1_i32 = arith.constant 1 : i32
    %0 = arith.muli %arg0, %c1_i32 : i32
    %1 = arith.addi %0, %arg1 : i32
    %c0_i32 = arith.constant 0 : i32
    %2 = arith.minsi %1, %c0_i32 : i32
    %c0_i32_0 = arith.constant 0 : i32
    %c0_i32_1 = arith.constant 0 : i32
    return %2, %c0_i32_0 : i32, i32
  }
  func.func @transform_2(%arg0: i32, %arg1: i32) -> (i32, i32) {
    %c0_i32 = arith.constant 0 : i32
    %c0_i32_0 = arith.constant 0 : i32
    return %arg0, %c0_i32 : i32, i32
  }
}

</mosaic_0001>

<bundles_post_ra>
// kernel: tpu_custom_call.1
= control target key start
LH: loop header
LB: loop body
LE: loop exit
PB: predicated region body
PF: predicated region fallthrough
CT: control target
= control target key end

     0   :  { %7 = vsyncpa [#allocation3], 0  ;;  %s1042_s0 = inlined_call_operand.hbm [shape: f32[16,128], index: 0, kind: input, shape index: {}]   ;;  %s1043_s1 = inlined_call_operand.hbm [shape: f32[16,128], index: 1, kind: input, shape index: {}]   ;;  %s1044_s2 = inlined_call_operand.hbm [shape: f32[16,128], index: 2, kind: output, shape index: {}]  }
   0x1   :  { %9 = vsyncpa [#allocation3 + $0x1], 0 }
   0x2   :  { %10 = vsyncpa [#allocation6], 0 }
   0x3   :  { %12 = vsyncpa [#allocation6 + $0x1], 0 }
   0x4   :  { %13 = vsyncpa [#allocation4], 0 }
   0x5   :  { %15 = vsyncpa [#allocation4 + $0x1], 0  ;;  %s804_s9 = smov 0   ;;  %s806_s10 = smov 0  }
   0x6   :  { %s808_s11 = smov 0   ;;  %s810_s12 = smov 0  }
   0x7   :  { %s812_s13 = smov 0   ;;  %s814_s14 = smov 0  }
   0x8   :  { %s816_s15 = smov 0   ;;  %s818_s16 = smov 0  }
   0x9 LB: > { %s475_s17 = sadd.s32 4294967295, %s781_s16   ;;  %s476_s18 = sadd.s32 4294967294, %s781_s16   ;;  %s781_s16 = sphi %s818_s16, %s21_s16   ;;  %s777_s15 = sphi %s816_s15, %s1063_s15   ;;  %s773_s14 = sphi %s814_s14, %s1062_s14   ;;  %s769_s13 = sphi %s812_s13, %s1032_s13   ;;  %s765_s12 = sphi %s810_s12, %s1061_s12   ;;  %s761_s11 = sphi %s808_s11, %s1060_s11   ;;  %s757_s10 = sphi %s806_s10, %s1059_s10   ;;  %s753_s9 = sphi %s804_s9, %s1058_s9  }
   0xa   : > { %s33_s19 = sadd.s32 1, %s777_s15  ;;  %p750_p1 = scmp.ne.s32.totalorder %s769_s13, 0 }
   0xb   : > { %p35_p0 = scmp.ge.s32.totalorder %s33_s19, 2  ;;  %p54_p2 = scmp.eq.s32.totalorder %s781_s16, 0 }
   0xc   : > { %p59_p3 = scmp.ne.s32.totalorder %s769_s13, %s765_s12  ;;  %p60_p5 = scmp.eq.s32.totalorder %s475_s17, 0 }
   0xd   : > { %s1065_s19 = smov (%p35_p0, %s33_s19), 0  ;;  %p850_p4 = por %p750_p1, %p54_p2 }
   0xe   : > { %p854_p6 = por %p60_p5, %p59_p3  ;;  %s101_s22 = ssub.s32 %s777_s15, %s1065_s19 }
   0xf   : > { %p102_p7 = scmp.eq.s32.totalorder %s101_s22, 0  ;;  %s104_s23 = sadd.s32 1, %s761_s11 }
  0x10   : > { %s1048_s21 = scalar_select %p854_p6, 1, 0 }
  0x11   : > { %s862_s24 = scalar_select %p102_p7, %s761_s11, %s104_s23  }
  0x12   : > { %p114_p8 = scmp.ne.s32.totalorder %s761_s11, %s757_s10  ;;  %p115_p9 = scmp.eq.s32.totalorder %s475_s17, 1 }
  0x13   : > { %p120_p10 = scmp.ne.s32.totalorder %s757_s10, %s753_s9  ;;  %p121_p11 = scmp.eq.s32.totalorder %s476_s18, 1 }
  0x14   : > { %p868_p12 = por %p115_p9, %p114_p8  ;;  %p517_p1 = scmp.lt.s32.totalorder %s781_s16, 2 }
  0x15   : > { %p873_p0 = por %p121_p11, %p120_p10  ;;  %s783_s27 = smov [#allocation2]  }
  0x16   : > { %s1049_s25 = scalar_select %p868_p12, 1, 0 }
  0x17   : > { %s1050_s26 = scalar_select %p873_p0, 1, 0 }
  0x18   : > { %s155_s28 = sshll.u32 %s783_s27, 4  ;;  %p880_p2 = pnand %p517_p1, %p850_p4  ;;  %s156_s28 = int_to_ptr.vmem [resolvable:$true] %s155_s28 }
  0x19   : > { %s614_s4 = scalar_lea.hbm %s1042_s0, 256 }
  0x1a   : > { %p615_p3 = scmp.ne.s32.totalorder %s1042_s0, %s614_s4  ;;  %p616_p5 = pneg %p880_p2 }
  0x1b   : > { %p621_p8 = scmp.lt.u32.totalorder %s614_s4, %s614_s4  ;;  %p623_p9 = scmp.lt.u32.totalorder %s614_s4, %s1042_s0 }
  0x1c   : > { %p617_p7 = pnand %p616_p5, %p615_p3 }
  0x1d   : > { %p624_p10 = por %p623_p9, %p621_p8 }
  0x1e   : > { %p618_p4 = pneg %p617_p7 }
  0x20   : > { %p625_p11 = pnand %p624_p10, %p618_p4 }
  0x22   : > { %628 = shalt.err (!%p625_p11)
}
  0x23   : > { %s629_s12 = scalar_lea.vmem %s156_s28, 256  ;;  %s636_s17 = scalar_lea.vmem %s156_s28, 512 }
  0x24   : > { %p630_p1 = scmp.ne.s32.totalorder %s156_s28, %s629_s12  ;;  %p637_p12 = scmp.lt.s32.totalorder %s156_s28, %s156_s28 }
  0x25   : > { %p638_p6 = scmp.lt.s32.totalorder %s636_s17, %s629_s12 }
  0x26   : > { %p632_p13 = pnand %p630_p1, %p616_p5 }
  0x27   : > { %p639_p3 = por %p638_p6, %p637_p12 }
  0x28   : > { %p633_p0 = pneg %p632_p13 }
  0x2a   : > { %p640_p7 = pnand %p639_p3, %p633_p0 }
  0x2c   : > { %643 = shalt.err (!%p640_p7)
}
  0x2d   : > { %s784_s18 = smov 128   ;;  %s785_s20 = smov 8  }
  0x2e   : > { %509 = dma.hbm_to_vmem [thread:$0]  (!%p880_p2), %s1042_s0, 256, %s156_s28, [#allocation3], %s784_s18, %s784_s18, %s785_s20  }
  0x2f   : > { %p485_p13 = scmp.ge.s32.totalorder %s781_s16, 1  ;;  %p187_p4 = scmp.lt.s32.totalorder %s781_s16, 3 }
  0x30   : > { %s786_s30 = smov [#allocation5]   ;;  %s644_s6 = scalar_lea.hbm %s1043_s1, 256 }
  0x31   : > { %p911_p8 = pnand %p485_p13, %p187_p4  ;;  %s179_s3 = sshll.u32 %s786_s30, 4  ;;  %s180_s3 = int_to_ptr.vmem [resolvable:$true] %s179_s3 }
  0x32   : > { %p645_p6 = scmp.ne.s32.totalorder %s1043_s1, %s644_s6  ;;  %p651_p9 = scmp.lt.u32.totalorder %s644_s6, %s644_s6 }
  0x33   : > { %s1052_s27 = scalar_select %p911_p8, 1, 0 }
  0x34   : > { %p647_p12 = pnand %p645_p6, %p616_p5  ;;  %p653_p10 = scmp.lt.u32.totalorder %s644_s6, %s1043_s1 }
  0x36   : > { %p648_p0 = pneg %p647_p12  ;;  %p654_p11 = por %p653_p10, %p651_p9 }
  0x38   : > { %p655_p1 = pnand %p654_p11, %p648_p0 }
  0x3a   : > { %658 = shalt.err (!%p655_p1)
}
  0x3b   : > { %s659_s17 = scalar_lea.vmem %s180_s3, 256  ;;  %s666_s22 = scalar_lea.vmem %s180_s3, 512 }
  0x3c   : > { %p660_p3 = scmp.ne.s32.totalorder %s180_s3, %s659_s17  ;;  %p667_p4 = scmp.lt.s32.totalorder %s180_s3, %s180_s3 }
  0x3d   : > { %p668_p8 = scmp.lt.s32.totalorder %s666_s22, %s659_s17 }
  0x3e   : > { %p662_p7 = pnand %p660_p3, %p616_p5 }
  0x3f   : > { %p669_p6 = por %p668_p8, %p667_p4 }
  0x40   : > { %p663_p13 = pneg %p662_p7 }
  0x42   : > { %p670_p12 = pnand %p669_p6, %p663_p13 }
  0x44   : > { %673 = shalt.err (!%p670_p12)
}
  0x45   : > { %512 = dma.hbm_to_vmem [thread:$0]  (!%p880_p2), %s1043_s1, 256, %s180_s3, [#allocation6], %s784_s18, %s784_s18, %s785_s20  }
  0x46   : > { %p1053_p0 = scmp.ne.s32.totalorder %s1052_s27, 0 }
  0x47   : > { %s193_s4 = sand.u32 (!%p1053_p0), 1, %s769_s13   ;;  %p1054_p5 = scmp.ne.s32.totalorder (!%p1053_p0), %s1048_s21, 0 }
  0x48   : > { %191 = sbr.rel (%p1053_p0) target bundleno = 189 (0xbd), region = 28  ;;  %s486_s5 = sshll.u32 (!%p1053_p0), %s193_s4, 4 }
  0x49   : > { %s194_s6 = scalar_lea.sflag (!%p1053_p0), [#allocation3], %s193_s4  ;;  %s197_s7 = scalar_lea.vmem (!%p1053_p0), [#allocation2], %s486_s5 }
  0x4f   : > { %739 = dma.done.wait (%p1054_p5), %s194_s6, 256  }
  0x50   : > { %741 = vsyncadd (%p1054_p5), %s194_s6, 4294967040  ;;  %s203_s29 = scalar_lea.sflag [#allocation6], %s193_s4  ;;  %s206_s8 = scalar_lea.vmem [#allocation5], %s486_s5 }
  0x51   : > { %743 = dma.done.wait (%p1054_p5), %s203_s29, 256  }
  0x52   : > { %745 = vsyncadd (%p1054_p5), %s203_s29, 4294967040  ;;  %s229_s18 = sand.u32 1, %s757_s10   ;;  %s491_s20 = sshll.u32 %s773_s14, 4  ;;  %v787_v0 = vmov 0.0   ;;  %v960_v1 = vld [vmem:[%s197_s7] sm:$0xff]  ;;  %v962_v2 = vld [vmem:[%s197_s7 + $0x8] sm:$0xff] }
  0x53   : > { %s488_s27 = sshll.u32 %s229_s18, 3  ;;  %s955_s3 = sadd.s32 16, %s491_s20  ;;  %v247_v3 = vld [vmem:[%s206_s8] sm:$0xff]  ;;  %v248_v4 = vld [vmem:[%s206_s8 + $0x8] sm:$0xff]  ;;  %v253_v5 = vsub.f32 0.0, %v960_v1  ;;  %v254_v6 = vsub.f32 0.0, %v962_v2 }
  0x54   : > { %s957_s28 = scalar_lea.vmem [#allocation7], %s488_s27  ;;  %v287_v7 = vmul.f32 2.0, %v247_v3  ;;  %v288_v8 = vmul.f32 2.0, %v248_v4  ;;  %v259_v11 = vand.u32 2147483647, %v960_v1  ;;  %v249_v52 = vmul.f32 %v247_v3, %v960_v1  ;;  %p492_p2 = scmp.gt.s32.totalorder %s955_s3, 16 }
  0x55   : > { %244 = vst [vmem:[%s957_s28] sm:$0xff] %v787_v0  ;;  %v260_v12 = vand.u32 2147483647, %v962_v2  ;;  %v250_v54 = vmul.f32 %v248_v4, %v962_v2  ;;  %v256_v3 = vmax.f32 %v254_v6, 0.0 }
  0x56   : > { %v489_v9 = vadd.f32 -1.0, %v287_v7  ;;  %v490_v10 = vadd.f32 -1.0, %v288_v8  ;;  %v261_v16 = vsub.f32 0.0, %v259_v11  ;;  %v251_v0 = vsub.f32 %v960_v1, %v249_v52 }
  0x57   : > { %v262_v18 = vsub.f32 0.0, %v260_v12  ;;  %v255_v7 = vmax.f32 %v253_v5, 0.0  ;;  %v252_v4 = vsub.f32 %v962_v2, %v250_v54 }
  0x58   : > { %v291_v13 = vmul.f32 %v489_v9, %v253_v5  ;;  %v292_v14 = vmul.f32 %v490_v10, %v254_v6  ;;  %v263_v22 = vmul.f32 1.442695, %v261_v16 }
  0x59   : > { %v265_v24 = vmul.f32 1.442695, %v262_v18 }
  0x5a   : > { %v295_v15 = vand.u32 2147483647, %v291_v13  ;;  %v296_v17 = vand.u32 2147483647, %v292_v14  ;;  %v293_v41 = vmin.f32 %v291_v13, 0.0  ;;  %v294_v44 = vmin.f32 %v292_v14, 0.0 }
  0x5b   : > { %v257_v13 = vadd.f32 %v255_v7, %v251_v0  ;;  %v258_v14 = vadd.f32 %v256_v3, %v252_v4 }
  0x5c   : > { %v297_v19 = vsub.f32 0.0, %v295_v15  ;;  %v298_v20 = vsub.f32 0.0, %v296_v17  ;;  %v339_v2 = vld [vmem:[%s957_s28] sm:$0xff] (!%p492_p2) }
  0x5e   : > { %v299_v21 = vmul.f32 1.442695, %v297_v19  ;;  %v301_v23 = vmul.f32 1.442695, %v298_v20 }
  0x60   : > { %594 = vpow2.f32 %v299_v21 }
  0x61   : > { %596 = vpow2.f32 %v301_v23 }
  0x62   : > { %598 = vpow2.f32 %v263_v22 }
  0x63   : > { %600 = vpow2.f32 %v265_v24 }
  0x6a   : > { %v595_v25 = vpop.eup %594 }
  0x6b   : > { %v597_v26 = vpop.eup %596  ;;  %v303_v27 = vadd.f32 1.0, %v595_v25  ;;  %v306_v31 = vmul.f32 -0.5, %v595_v25  ;;  %v309_v36 = vand.u32 2147483647, %v595_v25 }
  0x6c   : > { %v312_v28 = vadd.f32 1.0, %v597_v26  ;;  %v599_v29 = vpop.eup %598  ;;  %v315_v32 = vmul.f32 -0.5, %v597_v26  ;;  %v318_v38 = vand.u32 2147483647, %v597_v26 }
  0x6d   : > { %602 = vlog2.f32 %v303_v27  ;;  %v601_v30 = vpop.eup %600  ;;  %v267_v33 = vadd.f32 1.0, %v599_v29  ;;  %v307_v35 = vadd.f32 1.0, %v306_v31  ;;  %vm310_vm0 = vcmp.lt.f32.partialorder %v309_v36, 0.0004427343 }
  0x6e   : > { %604 = vlog2.f32 %v312_v28  ;;  %v276_v34 = vadd.f32 1.0, %v601_v30  ;;  %v316_v37 = vadd.f32 1.0, %v315_v32  ;;  %vm319_vm1 = vcmp.lt.f32.partialorder %v318_v38, 0.0004427343 }
  0x6f   : > { %606 = vlog2.f32 %v267_v33  ;;  %v308_v39 = vmul.f32 %v595_v25, %v307_v35  ;;  %v270_v46 = vmul.f32 -0.5, %v599_v29  ;;  %v279_v48 = vmul.f32 -0.5, %v601_v30 }
  0x70   : > { %608 = vlog2.f32 %v276_v34  ;;  %v317_v42 = vmul.f32 %v597_v26, %v316_v37  ;;  %v273_v58 = vand.u32 2147483647, %v599_v29  ;;  %v282_v62 = vand.u32 2147483647, %v601_v30 }
  0x71   : > { %v271_v55 = vadd.f32 1.0, %v270_v46  ;;  %v280_v59 = vadd.f32 1.0, %v279_v48 }
  0x72   : > { %vm274_vm2 = vcmp.lt.f32.partialorder %v273_v58, 0.0004427343  ;;  %vm283_vm3 = vcmp.lt.f32.partialorder %v282_v62, 0.0004427343 }
  0x73   : > { %v272_v10 = vmul.f32 %v599_v29, %v271_v55  ;;  %v281_v12 = vmul.f32 %v601_v30, %v280_v59 }
  0x77   : > { %v603_v40 = vpop.eup %602 }
  0x78   : > { %v605_v43 = vpop.eup %604  ;;  %v305_v45 = vmul.f32 0.6931472, %v603_v40 }
  0x79   : > { %v314_v47 = vmul.f32 0.6931472, %v605_v43  ;;  %v607_v57 = vpop.eup %606 }
  0x7a   : > { %v311_v49 = vsel %vm310_vm0, %v308_v39, %v305_v45  ;;  %v609_v61 = vpop.eup %608  ;;  %v269_v9 = vmul.f32 0.6931472, %v607_v57 }
  0x7b   : > { %v320_v50 = vsel %vm319_vm1, %v317_v42, %v314_v47  ;;  %v321_v51 = vsub.f32 %v293_v41, %v311_v49  ;;  %v278_v11 = vmul.f32 0.6931472, %v609_v61 }
  0x7c   : > { %v322_v53 = vsub.f32 %v294_v44, %v320_v50  ;;  %v275_v15 = vsel %vm274_vm2, %v272_v10, %v269_v9 }
  0x7d   : > { %v323_v56 = vmul.f32 2.0, %v321_v51  ;;  %v284_v16 = vsel %vm283_vm3, %v281_v12, %v278_v11  ;;  %v285_v1 = vadd.f32 %v275_v15, %v257_v13 }
  0x7e   : > { %v324_v60 = vmul.f32 2.0, %v322_v53  ;;  %v286_v5 = vadd.f32 %v284_v16, %v258_v14 }
  0x7f   : > { %v325_v63 = vmul.f32 1.442695, %v323_v56 }
  0x80   : > { %v327_v8 = vmul.f32 1.442695, %v324_v60 }
  0x81   : > { %610 = vpow2.f32 %v325_v63 }
  0x82   : > { %612 = vpow2.f32 %v327_v8 }
  0x87   : > { %338 = sbr.rel (%p492_p2) target bundleno = 148 (0x94), region = 44 }
  0x8b   : > { %v611_v17 = vpop.eup %610 }
  0x8c   : > { %v613_v18 = vpop.eup %612  ;;  %v329_v6 = vmul.f32 %v611_v17, %v285_v1 }
  0x8d   : > { %v330_v19 = vmul.f32 %v613_v18, %v286_v5 }
  0x8f   : > { %v340_v20 = vadd.f32 %v330_v19, %v329_v6 }
  0x91   : > { %v341_v21 = vadd.f32 %v340_v20, %v339_v2 }
  0x93   : > { %342 = vst [vmem:[%s957_s28] sm:$0xff] %v341_v21 }
  0x94 PF: > { %p493_p8 = scmp.le.s32.totalorder %s955_s3, 16 }
  0x95   : > { %v346_v22 = vlaneseq (!%p493_p8)  ;;  %v349_v23 = vstv (!%p493_p8), %s491_s20 }
  0x96   : > { %345 = sbr.rel (%p493_p8) target bundleno = 164 (0xa4), region = 48 }
  0x97   : > { %v347_v24 = vshrl.u32 (!%p493_p8), %v346_v22, 7 }
  0x99   : > { %v348_v25 = vadd.s32 (!%p493_p8), 8, %v347_v24  ;;  %v350_v26 = vadd.s32 (!%p493_p8), %v349_v23, %v347_v24 }
  0x9a   : > { %v356_v30 = vld [vmem:[%s957_s28] sm:$0xff] (!%p493_p8) }
  0x9b   : > { %v351_v27 = vadd.s32 (!%p493_p8), %v349_v23, %v348_v25  ;;  %vm352_vm4 = vcmp.lt.s32.totalorder (!%p493_p8), %v350_v26, 16 }
  0x9c   : > { %v354_v28 = vsel (!%p493_p8), %vm352_vm4, %v329_v6, 0.0 }
  0x9d   : > { %vm353_vm5 = vcmp.lt.s32.totalorder %v351_v27, 16 }
  0x9e   : > { %v355_v29 = vsel %vm353_vm5, %v330_v19, 0.0 }
  0x9f   : > { %v357_v31 = vadd.f32 %v355_v29, %v354_v28 }
  0xa1   : > { %v358_v32 = vadd.f32 %v357_v31, %v356_v30 }
  0xa3   : > { %359 = vst [vmem:[%s957_s28] sm:$0xff] %v358_v32 }
  0xa4 PF: > { %s495_s21 = sshll.u32 %s773_s14, 7  ;;  %s374_s23 = sshll.u32 %s957_s28, 4  ;;  %s375_s23 = int_to_ptr.vmem [resolvable:$true] %s374_s23 }
  0xa5   : > { %s992_s22 = scalar_lea.hbm %s1044_s2, %s495_s21  ;;  %s361_s30 = scalar_lea.sflag [#allocation4], %s229_s18 }
  0xa6   : > { %s674_s4 = scalar_lea.vmem %s375_s23, 128  ;;  %p1055_p10 = scmp.ne.s32.totalorder %s1049_s25, 0 }
  0xa7   : > { %p675_p9 = scmp.ne.s32.totalorder %s375_s23, %s674_s4  ;;  %s788_s5 = smov [#allocation7]  }
  0xa8   : > { %s678_s6 = sshll.u32 %s788_s5, 4  ;;  %s679_s6 = int_to_ptr.vmem [resolvable:$false] %s678_s6 }
  0xa9   : > { %p676_p11 = pnand %p675_p9, %p1055_p10  ;;  %s680_s7 = scalar_lea.vmem %s679_s6, 256 }
  0xaa   : > { %p681_p3 = scmp.lt.s32.totalorder %s375_s23, %s679_s6  ;;  %p682_p7 = scmp.lt.s32.totalorder %s680_s7, %s674_s4 }
  0xab   : > { %p677_p1 = pneg %p676_p11 }
  0xac   : > { %p683_p13 = por %p682_p7, %p681_p3 }
  0xae   : > { %p684_p4 = pnand %p683_p13, %p677_p1 }
  0xb0   : > { %687 = shalt.err (!%p684_p4)
}
  0xb1   : > { %s688_s14 = scalar_lea.hbm %s992_s22, 128  ;;  %s692_s18 = scalar_lea.hbm %s1044_s2, 256 }
  0xb2   : > { %p689_p6 = scmp.ne.s32.totalorder %s992_s22, %s688_s14  ;;  %p693_p5 = scmp.lt.u32.totalorder %s992_s22, %s1044_s2 }
  0xb3   : > { %p694_p2 = scmp.lt.u32.totalorder %s692_s18, %s688_s14  ;;  %p696_p9 = scmp.lt.u32.totalorder %s688_s14, %s992_s22 }
  0xb4   : > { %p690_p12 = pnand %p689_p6, %p1055_p10 }
  0xb5   : > { %p695_p8 = por %p694_p2, %p693_p5 }
  0xb6   : > { %p691_p0 = pneg %p690_p12 }
  0xb7   : > { %p697_p11 = por %p696_p9, %p695_p8 }
  0xb9   : > { %p698_p1 = pnand %p697_p11, %p691_p0 }
  0xbb   : > { %701 = shalt.err (!%p698_p1)
}
  0xbc   : > { %504 = dma.vmem_to_hbm [thread:$0]  (%p1055_p10), %s375_s23, 128, %s992_s22, %s361_s30  }
  0xbd PF: > { %s386_s3 = sand.u32 1, %s753_s9   ;;  %p1056_p3 = scmp.ne.s32.totalorder %s1050_s26, 0 }
  0xbe   : > { %p1057_p7 = scmp.ge.s32.totalorder %s781_s16, 2  ;;  %s387_s28 = scalar_lea.sflag [#allocation4], %s386_s3 }
  0xc0   : > { %p514_p13 = pnand %p1057_p7, %p1056_p3 }
  0xc2   : > { %747 = dma.done.wait (!%p514_p13), %s387_s28, 128  }
  0xc3   : > { %749 = vsyncadd (!%p514_p13), %s387_s28, 4294967168  ;;  %s21_s16 = sadd.s32 1, %s781_s16   ;;  %s1058_s9 = smov %s757_s10 }
  0xc4   : > { %p18_p4 = scmp.ge.s32.totalorder %s21_s16, 4   ;;  %s1059_s10 = smov %s761_s11 }
  0xc5   : > { %s1060_s11 = smov %s862_s24  ;;  %s1061_s12 = smov %s769_s13 }
  0xc6   : > { %s1032_s13 = smov 0   ;;  %s1062_s14 = smov %s777_s15 }
  0xc7   : > { %s1063_s15 = smov %s1065_s19  ;;  %20 = sbr.rel (!%p18_p4) target bundleno = 9 (0x9), region = 98 }
  0xce   :  { %392 = vsyncpa [#allocation3], 1 }
  0xcf   :  { %394 = vsyncpa [#allocation3 + $0x1], 1 }
  0xd0   :  { %395 = vsyncpa [#allocation6], 1 }
  0xd1   :  { %397 = vsyncpa [#allocation6 + $0x1], 1 }
  0xd2   :  { %398 = vsyncpa [#allocation4], 1 }
  0xd3   :  { %400 = vsyncpa [#allocation4 + $0x1], 1 }

</bundles_post_ra>
